<compile_context>
chip_gen: v7x
topology: tpu7x:2x2x1
jax: 0.10.0
libtpu: 0.0.40
codegen_flags: <defaults>
</compile_context>

<pallas_src>
import functools
import math

import numpy as np
import jax
import jax.numpy as jnp
from jax.experimental import pallas as pl
from jax.experimental.pallas import tpu as pltpu


# ---------------------------------------------------------------------------
# Pass 1: observer — per-block partial min/max of the RAW input ("parallel").
# ---------------------------------------------------------------------------
def _observer_kernel(x_ref, min_ref, max_ref):
    xt = x_ref[...].astype(jnp.float32)            # (tmg, GL) lane-dense tile
    min_ref[...] = jnp.full(min_ref.shape, jnp.min(xt), jnp.float32)
    max_ref[...] = jnp.full(max_ref.shape, jnp.max(xt), jnp.float32)


# ---------------------------------------------------------------------------
# Pass 2: fake-quant + 2x2/2 max pool (window-max + compaction via MXU).
# ---------------------------------------------------------------------------
def _pool_quant_kernel(qp_ref, sel_ref, x_ref, o_ref, *, qmin, qmax):
    """qp_ref : (3,) SMEM scalars [scale, zero_point, 1/scale]
    sel_ref : (4, GL, GWo) resident VMEM 0/1-selection matrices
    x_ref   : (tmg, GL)  raw input tile
    o_ref   : (tmg, GWo) pooled, fake-quantized output tile."""
    scale = qp_ref[0]
    zp = qp_ref[1]
    inv_scale = qp_ref[2]                           # hoisted reciprocal

    xt = x_ref[...].astype(jnp.float32)                         # (tmg, GL)
    # qi.quant: integers on [qmin, qmax] (monotone -> pool afterwards is exact)
    q = jnp.clip(jnp.round(xt * inv_scale + zp), qmin, qmax)

    # 2x2 window max + lane compaction: four 0/1-selection matmuls on the idle
    # MXU.  Exact in bf16 MXU mode because operands are integers <= 256 and 0/1.
    p00 = jnp.dot(q, sel_ref[0], preferred_element_type=jnp.float32)
    p01 = jnp.dot(q, sel_ref[1], preferred_element_type=jnp.float32)
    p10 = jnp.dot(q, sel_ref[2], preferred_element_type=jnp.float32)
    p11 = jnp.dot(q, sel_ref[3], preferred_element_type=jnp.float32)
    q_pool = jnp.maximum(jnp.maximum(p00, p01), jnp.maximum(p10, p11))

    # qi.dequant on the 4x-smaller pooled tile.
    o_ref[...] = (scale * (q_pool - zp)).astype(o_ref.dtype)


# ---------------------------------------------------------------------------
# Wrapper helpers.
# ---------------------------------------------------------------------------
def _vmem_capacity_bytes():
    try:
        return int(pltpu.get_tpu_info().vmem_capacity_bytes)
    except Exception:
        return 64 << 20          # conservative: v7x per-TensorCore VMEM


def _choose_group(M, W, Wo):
    """Rows folded into the lane dim.  Prefer lane-dense OUTPUT (G*Wo % 128 == 0,
    which also makes the input lane-dense), then lane-dense input only, else 1.
    Keep the hoisted selection matrices small (<= 4 MiB)."""
    L = 2 * W

    def sel_bytes(g):
        return 4 * (g * L) * (g * Wo) * 4

    g_out = 128 // math.gcd(Wo, 128)   # lane-dense output stores (and input)
    g_in = 128 // math.gcd(L, 128)     # lane-dense input loads only
    for g in (g_out, g_in, 1):
        if M % g == 0 and sel_bytes(g) <= (4 << 20):
            return g
    return 1


def _choose_row_tile(Mg, row_bytes, budget):
    """Biggest row tile within `budget` bytes: multiple of 8 dividing Mg, or the
    whole array if it fits; padding Mg is the last-resort fallback."""
    if Mg * row_bytes <= budget:
        return Mg, Mg                              # single block covers all
    tmax = max(8, (budget // row_bytes) // 8 * 8)
    t = (min(tmax, Mg) // 8) * 8
    while t >= 8:
        if Mg % t == 0:
            return t, Mg
        t -= 8
    tmg = tmax                                     # pad fallback (rare)
    return tmg, ((Mg + tmg - 1) // tmg) * tmg


# ---------------------------------------------------------------------------
# Public entry point.
# ---------------------------------------------------------------------------
def qmaxpool2d(x, *, pool=2, stride=2, qmin=0, qmax=255):
    """Fake-quantize x (NCHW) with a global min/max observer, then 2x2/2 max pool."""
    assert stride == pool == 2, "this kernel supports kernel_size == stride == 2"
    assert 0 <= qmin < qmax <= 256, "selection-matmul exactness needs qmax <= 256"
    N, C, H, W = x.shape
    assert H % 2 == 0 and W % 2 == 0, "H and W must be divisible by the pool size"
    Ho, Wo = H // 2, W // 2
    M = N * C * Ho
    L = 2 * W

    # ---- layout: fold G rows into the lane dim (free, contiguous reshapes).
    G = _choose_group(M, W, Wo)
    GL, GWo = G * L, G * Wo
    Mg = M // G
    x_wide = x.reshape(Mg, GL)

    # ---- per-generation block budget + scoped-VMEM limit.
    vmem = _vmem_capacity_bytes()
    blk_budget = max(2 << 20, min(8 << 20, vmem // 20))
    itemsize = jnp.dtype(x.dtype).itemsize
    tmg, Mg_pad = _choose_row_tile(Mg, GL * itemsize, blk_budget)
    if Mg_pad != Mg:
        # TODO(synk): edge-pad costs one extra HBM copy; only hit for awkward M.
        x_wide = jnp.pad(x_wide, ((0, Mg_pad - Mg), (0, 0)), mode="edge")
    n_blocks = Mg_pad // tmg

    in_blk = tmg * GL * itemsize
    out_blk = tmg * GWo * itemsize
    sel_bytes = 4 * GL * GWo * 4
    vmem_limit = int(min(vmem * 3 // 4,
                         max(32 << 20,
                             2 * in_blk + 2 * out_blk + 3 * tmg * GL * 4
                             + sel_bytes + (4 << 20))))

    # ---- Pass 1: parallel partial min/max of the raw input (qi.update).
    part_shape = (n_blocks * 8, 128)
    mins, maxs = pl.pallas_call(
        _observer_kernel,
        out_shape=(jax.ShapeDtypeStruct(part_shape, jnp.float32),
                   jax.ShapeDtypeStruct(part_shape, jnp.float32)),
        grid=(n_blocks,),
        in_specs=[pl.BlockSpec((tmg, GL), lambda i: (i, 0))],
        out_specs=(pl.BlockSpec((8, 128), lambda i: (i, 0)),
                   pl.BlockSpec((8, 128), lambda i: (i, 0))),
        compiler_params=pltpu.CompilerParams(
            dimension_semantics=("parallel",),
            vmem_limit_bytes=vmem_limit),
        cost_estimate=pl.CostEstimate(
            flops=int(x_wide.size),
            transcendentals=0,
            bytes_accessed=int(x_wide.size * itemsize + 2 * 8 * 128 * 4 * n_blocks)),
    )(x_wide)
    min_v = jnp.min(mins)
    max_v = jnp.max(maxs)

    # ---- scale / zero-point (asymmetric uint8 range), computed once.
    qminf, qmaxf = float(qmin), float(qmax)
    scale = jnp.maximum((max_v - min_v) / (qmaxf - qminf), 1e-8)
    zp = jnp.round(jnp.clip(qmaxf - max_v / scale, qminf, qmaxf))
    qparams = jnp.stack([scale, zp, 1.0 / scale]).astype(jnp.float32)

    # ---- hoisted 0/1-selection matrices: output col g*Wo+k gathers the max of
    #      input lanes {g*L + a*W + 2k + b : a,b in {0,1}} (the 2x2 window).
    sel_np = np.zeros((4, GL, GWo), np.float32)
    g_idx = np.arange(G)[:, None]
    k_idx = np.arange(Wo)[None, :]
    dst = (g_idx * Wo + k_idx).reshape(-1)
    for s, (a, b) in enumerate(((0, 0), (0, 1), (1, 0), (1, 1))):
        src = (g_idx * L + a * W + 2 * k_idx + b).reshape(-1)
        sel_np[s, src, dst] = 1.0
    sel = jnp.asarray(sel_np)

    # ---- Pass 2: fake-quant + 2x2 pool, lane-dense in/out, independent tiles.
    out = pl.pallas_call(
        functools.partial(_pool_quant_kernel, qmin=qminf, qmax=qmaxf),
        out_shape=jax.ShapeDtypeStruct((Mg_pad, GWo), x.dtype),
        grid=(n_blocks,),
        in_specs=[
            pl.BlockSpec(memory_space=pltpu.MemorySpace.SMEM),     # (3,) scalars
            pl.BlockSpec((4, GL, GWo), lambda i: (0, 0, 0)),       # resident selectors
            pl.BlockSpec((tmg, GL), lambda i: (i, 0)),             # input tile
        ],
        out_specs=pl.BlockSpec((tmg, GWo), lambda i: (i, 0)),
        compiler_params=pltpu.CompilerParams(
            dimension_semantics=("parallel",),
            vmem_limit_bytes=vmem_limit),
        cost_estimate=pl.CostEstimate(
            flops=int(8 * Mg_pad * GL * GWo),
            transcendentals=0,
            bytes_accessed=int(Mg_pad * (GL + GWo) * itemsize + sel_bytes)),
    )(qparams, sel, x_wide)

    out = out[:Mg]                      # drop padded rows (no-op if unpadded)
    return out.reshape(N, C, Ho, Wo)    # free contiguous reshape


# ---------------------------------------------------------------------------
# Pure-JAX reference for QMaxPool2d.forward:
#   qi.update -> qi.quant -> qi.dequant -> MaxPool2d(2, 2).
# ---------------------------------------------------------------------------
def _reference(x, *, pool=2, qmin=0, qmax=255):
    qminf, qmaxf = float(qmin), float(qmax)
    min_v = jnp.min(x)
    max_v = jnp.max(x)
    scale = jnp.maximum((max_v - min_v) / (qmaxf - qminf), 1e-8)
    zp = jnp.round(jnp.clip(qmaxf - max_v / scale, qminf, qmaxf))
    inv_scale = 1.0 / scale
    q = jnp.clip(jnp.round(x * inv_scale + zp), qminf, qmaxf)
    x_dq = scale * (q - zp)
    N, C, H, W = x.shape
    xr = x_dq.reshape(N, C, H // pool, pool, W // pool, pool)
    return jnp.max(xr, axis=(3, 5))


if __name__ == "__main__":
    key = jax.random.PRNGKey(0)
    # small shapes consistent with an NCHW conv-net feature map
    x = jax.random.normal(key, (2, 4, 16, 16), dtype=jnp.float32)

    y = qmaxpool2d(x, pool=2, stride=2, qmin=0, qmax=255)
    jax.block_until_ready(y)

    y_ref = _reference(x, pool=2, qmin=0, qmax=255)
    assert y.shape == (2, 4, 8, 8), y.shape
    assert jnp.allclose(y, y_ref, atol=1e-5, rtol=1e-5), "mismatch vs reference"

    print("KERNEL_OK")
</pallas_src>

<mosaic_0001>
module attributes {stable_mosaic.version = 11 : i64} {
  func.func @_observer_kernel(%arg0: i32, %arg1: memref<4x512xf32, #tpu.memory_space<vmem>>, %arg2: memref<8x128xf32, #tpu.memory_space<vmem>>, %arg3: memref<8x128xf32, #tpu.memory_space<vmem>>) attributes {dimension_semantics = [#tpu.dimension_semantics<parallel>], iteration_bounds = array<i64: 1>, scalar_prefetch = 0 : i64, scratch_operands = 0 : i64, tpu.core_type = #tpu.core_type<tc>, window_params = [{transform_indices = @transform_0, window_bounds = array<i64: 4, 512>}, {transform_indices = @transform_1, window_bounds = array<i64: 8, 128>}, {transform_indices = @transform_2, window_bounds = array<i64: 8, 128>}]} {
    %c0 = arith.constant 0 : index
    %c0_0 = arith.constant 0 : index
    %0 = vector.load %arg1[%c0, %c0_0] : memref<4x512xf32, #tpu.memory_space<vmem>>, vector<4x512xf32>
    %1 = vector.shape_cast %0 : vector<4x512xf32> to vector<1x4x512xf32>
    %cst = arith.constant dense<0x7F800000> : vector<1xf32>
    %2 = vector.multi_reduction <minimumf>, %1, %cst [1, 2] : vector<1x4x512xf32> to vector<1xf32>
    %3 = vector.shape_cast %2 : vector<1xf32> to vector<1x1x1xf32>
    %4 = vector.extract %3[0, 0, 0] : f32 from vector<1x1x1xf32>
    %5 = vector.broadcast %4 : f32 to vector<8x128xf32>
    %c0_1 = arith.constant 0 : index
    %c0_2 = arith.constant 0 : index
    %6 = vector.load %arg2[%c0_1, %c0_2] : memref<8x128xf32, #tpu.memory_space<vmem>>, vector<8x128xf32>
    tpu.vector_store %arg2[%c0_1, %c0_2], %5 {strides = array<i32>} : memref<8x128xf32, #tpu.memory_space<vmem>>, vector<8x128xf32>,
    %7 = vector.shape_cast %0 : vector<4x512xf32> to vector<1x4x512xf32>
    %cst_3 = arith.constant dense<0xFF800000> : vector<1xf32>
    %8 = vector.multi_reduction <maximumf>, %7, %cst_3 [1, 2] : vector<1x4x512xf32> to vector<1xf32>
    %9 = vector.shape_cast %8 : vector<1xf32> to vector<1x1x1xf32>
    %10 = vector.extract %9[0, 0, 0] : f32 from vector<1x1x1xf32>
    %11 = vector.broadcast %10 : f32 to vector<8x128xf32>
    %c0_4 = arith.constant 0 : index
    %c0_5 = arith.constant 0 : index
    %12 = vector.load %arg3[%c0_4, %c0_5] : memref<8x128xf32, #tpu.memory_space<vmem>>, vector<8x128xf32>
    tpu.vector_store %arg3[%c0_4, %c0_5], %11 {strides = array<i32>} : memref<8x128xf32, #tpu.memory_space<vmem>>, vector<8x128xf32>,
    return
  }
  func.func @transform_0(%arg0: i32) -> (i32, i32) {
    %c0_i32 = arith.constant 0 : i32
    %c0_i32_0 = arith.constant 0 : i32
    return %arg0, %c0_i32 : i32, i32
  }
  func.func @transform_1(%arg0: i32) -> (i32, i32) {
    %c0_i32 = arith.constant 0 : i32
    %c0_i32_0 = arith.constant 0 : i32
    return %arg0, %c0_i32 : i32, i32
  }
  func.func @transform_2(%arg0: i32) -> (i32, i32) {
    %c0_i32 = arith.constant 0 : i32
    %c0_i32_0 = arith.constant 0 : i32
    return %arg0, %c0_i32 : i32, i32
  }
}

</mosaic_0001>

<bundles_post_ra>
// kernel: tpu_custom_call.1
= control target key start
LH: loop header
LB: loop body
LE: loop exit
PB: predicated region body
PF: predicated region fallthrough
CT: control target
= control target key end

     0   :  { %8 = vsyncpa [#allocation3], 0  ;;  %s233_s0 = inlined_call_operand.hbm [shape: f32[4,512], index: 0, kind: input, shape index: {}]   ;;  %s234_s1 = inlined_call_operand.hbm [shape: f32[8,128], index: 1, kind: output, shape index: {0}]   ;;  %s235_s2 = inlined_call_operand.hbm [shape: f32[8,128], index: 2, kind: output, shape index: {1}]  }
   0x1   :  { %9 = vsyncpa [#allocation4], 0 }
   0x2   :  { %10 = vsyncpa [#allocation7], 0  ;;  %s179_s9 = smov [#allocation2]   ;;  %s107_s13 = scalar_lea.hbm %s233_s0, 256 }
   0x3   :  { %s17_s10 = sshll.u32 %s179_s9, 4  ;;  %p108_p0 = scmp.ne.s32.totalorder %s233_s0, %s107_s13  ;;  %s18_s10 = int_to_ptr.vmem [resolvable:$true] %s17_s10 }
   0x4   :  { %p111_p1 = scmp.lt.u32.totalorder %s107_s13, %s233_s0 }
   0x6   :  { %p113_p2 = pnand %p111_p1, %p108_p0 }
   0x8   :  { %116 = shalt.err (!%p113_p2)
}
   0x9   :  { %s117_s18 = scalar_lea.vmem %s18_s10, 256  ;;  %p122_p4 = scmp.lt.s32.totalorder %s18_s10, %s18_s10 }
   0xa   :  { %p118_p3 = scmp.ne.s32.totalorder %s18_s10, %s117_s18  ;;  %p123_p5 = scmp.lt.s32.totalorder %s117_s18, %s117_s18 }
   0xc   :  { %p124_p6 = por %p123_p5, %p122_p4 }
   0xe   :  { %p125_p7 = pnand %p124_p6, %p118_p3 }
  0x10   :  { %128 = shalt.err (!%p125_p7)
}
  0x11   :  { %20 = dma.hbm_to_vmem [thread:$0]  %s233_s0, 256, %s18_s10, [#allocation3]  }
  0x12   :  { %173 = dma.done.wait [#allocation3], 256  }
  0x13   :  { %174 = vsyncadd [#allocation3], 4294967040  ;;  %vm32_vm0 = vcmask 1043456   ;;  %v24_v0 = vld [vmem:[#allocation2] sm:$0xff]  ;;  %v25_v1 = vld [vmem:[#allocation2 + $0x8] sm:$0xff]  ;;  %s180_s0 = smov [#allocation5]  }
  0x14   :  { %v28_v2 = vcombine.high %v24_v0, %v24_v0  ;;  %v29_v3 = vcombine.high %v25_v1, %v25_v1  ;;  %v33_v4 = vsel %vm32_vm0, %v24_v0, inf  ;;  %v35_v5 = vsel %vm32_vm0, %v25_v1, inf  ;;  %s75_s21 = sshll.u32 %s180_s0, 4  ;;  %s181_s23 = smov [#allocation6]   ;;  %s76_s21 = int_to_ptr.vmem [resolvable:$true] %s75_s21 }
  0x15   :  { %v51_v6 = vsel %vm32_vm0, %v24_v0, -inf  ;;  %v53_v7 = vsel %vm32_vm0, %v25_v1, -inf  ;;  %s85_s24 = sshll.u32 %s181_s23, 4  ;;  %s129_s25 = scalar_lea.vmem %s76_s21, 128  ;;  %s86_s24 = int_to_ptr.vmem [resolvable:$true] %s85_s24 }
  0x16   :  { %v34_v8 = vsel %vm32_vm0, %v28_v2, inf  ;;  %v36_v9 = vsel %vm32_vm0, %v29_v3, inf  ;;  %v52_v10 = vsel %vm32_vm0, %v28_v2, -inf  ;;  %v54_v11 = vsel %vm32_vm0, %v29_v3, -inf  ;;  %p130_p8 = scmp.ne.s32.totalorder %s76_s21, %s129_s25  ;;  %p134_p9 = scmp.lt.s32.totalorder %s76_s21, %s76_s21 }
  0x17   :  { %v37_v12 = vmin.f32 %v33_v4, %v34_v8  ;;  %v38_v13 = vmin.f32 %v35_v5, %v36_v9  ;;  %v55_v14 = vmax.f32 %v51_v6, %v52_v10  ;;  %v56_v15 = vmax.f32 %v53_v7, %v54_v11  ;;  %p135_p10 = scmp.lt.s32.totalorder %s129_s25, %s129_s25 }
  0x19   :  { %v39_v16 = vmin.f32 %v37_v12, %v38_v13  ;;  %v57_v17 = vmax.f32 %v55_v14, %v56_v15  ;;  %p136_p11 = por %p135_p10, %p134_p9 }
  0x1b   :  { %40 = vmin.xlane.f32.xlu0 %v39_v16  ;;  %p137_p12 = pnand %p136_p11, %p130_p8 }
  0x1f   :  { %58 = vmax.xlane.f32.xlu0 %v57_v17 }
  0xa8   :  { %v41_v18 = vpop.xlane.xlu0 %40 }
  0xa9   :  { %v42_v19 = vrot.slane %v41_v18, 4 }
  0xab   :  { %v43_v20 = vmin.f32 %v41_v18, %v42_v19 }
  0xac   :  { %v59_v21 = vpop.xlane.xlu0 %58 }
  0xad   :  { %v44_v22 = vrot.slane %v43_v20, 2  ;;  %v60_v23 = vrot.slane %v59_v21, 4 }
  0xaf   :  { %v61_v24 = vmax.f32 %v59_v21, %v60_v23  ;;  %v45_v25 = vmin.f32 %v43_v20, %v44_v22 }
  0xb1   :  { %v62_v26 = vrot.slane %v61_v24, 2  ;;  %v46_v27 = vrot.slane %v45_v25, 1 }
  0xb3   :  { %v63_v28 = vmax.f32 %v61_v24, %v62_v26  ;;  %v47_v29 = vmin.f32 %v45_v25, %v46_v27 }
  0xb5   :  { %98 = vpush %v47_v29  ;;  %v64_v30 = vrot.slane %v63_v28, 1 }
  0xb7   :  { %v65_v31 = vmax.f32 %v63_v28, %v64_v30 }
  0xb9   :  { %100 = vpush %v65_v31 }
  0xe6   :  { %s99_s22 = spop %98 }
  0xe7   :  { %v49_v32 = vstv %s99_s22 }
  0xe8   :  { %50 = vst [vmem:[#allocation5] sm:$0xff] %v49_v32 }
  0xe9   :  { %140 = shalt.err (!%p137_p12)
}
  0xea   :  { %s141_s28 = scalar_lea.hbm %s234_s1, 128 }
  0xeb   :  { %p142_p13 = scmp.ne.s32.totalorder %s234_s1, %s141_s28  ;;  %p145_p0 = scmp.lt.u32.totalorder %s141_s28, %s234_s1 }
  0xed   :  { %p147_p1 = pnand %p145_p0, %p142_p13 }
  0xef   :  { %150 = shalt.err (!%p147_p1)
}
  0xf0   :  { %78 = dma.vmem_to_hbm [thread:$0]  %s76_s21, 128, %s234_s1, [#allocation4]  }
  0xf1   :  { %s101_s7 = spop %100  ;;  %s151_s8 = scalar_lea.vmem %s86_s24, 128 }
  0xf2   :  { %v67_v33 = vstv %s101_s7  ;;  %p152_p2 = scmp.ne.s32.totalorder %s86_s24, %s151_s8  ;;  %p156_p3 = scmp.lt.s32.totalorder %s86_s24, %s86_s24 }
  0xf3   :  { %68 = vst [vmem:[#allocation6] sm:$0xff] %v67_v33  ;;  %p157_p4 = scmp.lt.s32.totalorder %s151_s8, %s151_s8 }
  0xf5   :  { %p158_p5 = por %p157_p4, %p156_p3 }
  0xf7   :  { %p159_p6 = pnand %p158_p5, %p152_p2 }
  0xf9   :  { %162 = shalt.err (!%p159_p6)
}
  0xfa   :  { %s163_s11 = scalar_lea.hbm %s235_s2, 128 }
  0xfb   :  { %p164_p7 = scmp.ne.s32.totalorder %s235_s2, %s163_s11  ;;  %p167_p8 = scmp.lt.u32.totalorder %s163_s11, %s235_s2 }
  0xfd   :  { %p169_p9 = pnand %p167_p8, %p164_p7 }
  0xff   :  { %172 = shalt.err (!%p169_p9)
}
 0x100   :  { %88 = dma.vmem_to_hbm [thread:$0]  %s86_s24, 128, %s235_s2, [#allocation7]  }
 0x101   :  { %175 = dma.done.wait [#allocation4], 128  }
 0x102   :  { %176 = vsyncadd [#allocation4], 4294967168 }
 0x103   :  { %177 = dma.done.wait [#allocation7], 128  }
 0x104   :  { %178 = vsyncadd [#allocation7], 4294967168 }
 0x105   :  { %95 = vsyncpa [#allocation3], 1 }
 0x106   :  { %96 = vsyncpa [#allocation4], 1 }
 0x107   :  { %97 = vsyncpa [#allocation7], 1 }

</bundles_post_ra>
